<compile_context>
chip_gen: v5e
topology: v5e:2x2
jax: 0.10.0
libtpu: 0.0.40
codegen_flags: <defaults>
</compile_context>

<pallas_src>
import math

import jax
import jax.numpy as jnp
from jax.experimental import pallas as pl
from jax.experimental.pallas import tpu as pltpu


def _cdiv(a, b):
    return -(-a // b)


def _round_up(x, m):
    return _cdiv(x, m) * m


def _mlp_kernel(x_ref, w1_ref, b1_ref, w2_ref, b2_ref, w3_ref, b3_ref, o_ref):
    """fc1 -> ReLU -> fc2 -> ReLU -> fc3 on one (TM, F_in) batch tile.

    Matmuls run on the MXU with f32 accumulation; bias-add / ReLU stay in f32 on
    the VPU regardless of the (possibly bf16) matmul-input dtype.
    """
    cdt = w1_ref.dtype
    h1 = jnp.dot(x_ref[...], w1_ref[...], preferred_element_type=jnp.float32) + b1_ref[...]
    h1 = jnp.maximum(h1, 0.0)
    h2 = jnp.dot(h1.astype(cdt), w2_ref[...], preferred_element_type=jnp.float32) + b2_ref[...]
    h2 = jnp.maximum(h2, 0.0)
    q = jnp.dot(h2.astype(cdt), w3_ref[...], preferred_element_type=jnp.float32) + b3_ref[...]
    o_ref[...] = q.astype(o_ref.dtype)


def prepare_params(params, compute_dtype=jnp.float32):
    """One-time padding / casting of the MLP parameters (hoisted out of forward).

    Weights are stored [in, out]. The hidden dim is zero-padded to a multiple of
    128 lanes; the input-feature and n_actions dims stay unpadded (their blocks
    cover the full array dim). Zero bias padding keeps padded hidden lanes exactly
    0 through ReLU, so they cannot leak into fc3.

    compute_dtype=jnp.bfloat16 halves weight/activation DMA bytes on all TPU
    generations (v5e included): only matmul inputs are bf16; accumulation and the
    bias/ReLU epilogue remain f32.
    """
    w1, b1, w2, b2, w3, b3 = params
    f_in, hidden = w1.shape
    n_actions = w3.shape[1]
    # NOTE: if hidden_dim is ever scaled past 128, align to 256 on v6e/v7x (2x256 MXU).
    h_p = _round_up(hidden, 128)

    def pad_w(w, rows, cols):
        w = w.astype(compute_dtype)
        return jnp.pad(w, ((0, rows - w.shape[0]), (0, cols - w.shape[1])))

    def pad_b(b, cols):
        b = jnp.asarray(b, jnp.float32).reshape(1, -1)
        return jnp.pad(b, ((0, 0), (0, cols - b.shape[1])))

    return (
        pad_w(w1, f_in, h_p), pad_b(b1, h_p),
        pad_w(w2, h_p, h_p), pad_b(b2, h_p),
        pad_w(w3, h_p, n_actions), pad_b(b3, n_actions),
    )


def mlp_agent_forward(inputs, prepared_params, h=None, *, tile_m=1024, min_tiles=1):
    """MLPAgent.forward. Returns (q_values, None).

    inputs:          [B, input_shape] (flatten agents/timesteps into B for best perf).
    prepared_params: output of prepare_params() (padded once, reused across calls).
    tile_m:          max batch rows per grid step. Single-TC v5e/v6e: keep large
                     (fewer ~0.35us grid steps). On v7x pass min_tiles=2 so the
                     'parallel' batch axis shards across both TensorCores.
    """
    w1_p, b1_p, w2_p, b2_p, w3_p, b3_p = prepared_params
    B, f_in = inputs.shape
    assert w1_p.shape[0] == f_in, "prepared params do not match input feature size"
    h_p = w1_p.shape[1]
    n_actions = w3_p.shape[1]
    out_dtype = inputs.dtype
    cdt = w1_p.dtype

    # Batch tiling: as few grid steps as possible without over-padding B.
    sublane = 8 * max(1, 4 // jnp.dtype(cdt).itemsize)         # 8 (f32) / 16 (bf16)
    num_tiles = max(int(min_tiles), _cdiv(B, int(tile_m)))
    tm = _round_up(_cdiv(B, num_tiles), sublane)
    b_pad = num_tiles * tm

    # Cast to the matmul-input dtype in the wrapper (rides on the batch pad);
    # the feature dim stays unpadded.
    x_p = inputs.astype(cdt)
    if b_pad != B:
        x_p = jnp.pad(x_p, ((0, b_pad - B), (0, 0)))

    def const_spec(shape):
        # Same block every grid step -> weights/biases stay VMEM-resident.
        # TODO(synk): if hidden_dim is scaled up, add pipeline_mode=pl.Buffered(1)
        # here (resident blocks need no double buffer) to fit v7x's 64 MiB VMEM.
        return pl.BlockSpec(shape, lambda i: (0, 0))

    flops = 2 * b_pad * (f_in * h_p + h_p * h_p + h_p * n_actions)
    bytes_accessed = (
        x_p.size * x_p.dtype.itemsize
        + sum(a.size * a.dtype.itemsize for a in prepared_params)
        + b_pad * n_actions * jnp.dtype(out_dtype).itemsize
    )
    weight_bytes = sum(a.size * a.dtype.itemsize for a in prepared_params)
    io_tile_bytes = tm * (f_in * x_p.dtype.itemsize + n_actions * jnp.dtype(out_dtype).itemsize)
    act_bytes = 2 * tm * h_p * 4                                # f32 intermediates
    vmem_limit = int(min(2 * (weight_bytes + io_tile_bytes) + act_bytes + (4 << 20), 32 << 20))

    out = pl.pallas_call(
        _mlp_kernel,
        out_shape=jax.ShapeDtypeStruct((b_pad, n_actions), out_dtype),
        grid=(num_tiles,),
        in_specs=[
            pl.BlockSpec((tm, f_in), lambda i: (i, 0)),               # x: pipelined over batch
            const_spec((f_in, h_p)), const_spec((1, h_p)),            # fc1
            const_spec((h_p, h_p)), const_spec((1, h_p)),             # fc2
            const_spec((h_p, n_actions)), const_spec((1, n_actions)),  # fc3
        ],
        out_specs=pl.BlockSpec((tm, n_actions), lambda i: (i, 0)),
        compiler_params=pltpu.CompilerParams(
            dimension_semantics=("parallel",),
            vmem_limit_bytes=vmem_limit,
        ),
        cost_estimate=pl.CostEstimate(
            flops=flops, transcendentals=0, bytes_accessed=bytes_accessed),
    )(x_p, w1_p, b1_p, w2_p, b2_p, w3_p, b3_p)

    q = out[:B] if b_pad != B else out
    return q, None


def init_params(key, input_shape, hidden_dim, n_actions, dtype=jnp.float32):
    """Deterministic init mirroring nn.Linear's default U(-1/sqrt(fan_in), +1/sqrt(fan_in))."""
    keys = jax.random.split(key, 6)

    def linear(kw, kb, fan_in, fan_out):
        bound = 1.0 / math.sqrt(fan_in)
        w = jax.random.uniform(kw, (fan_in, fan_out), dtype, -bound, bound)
        b = jax.random.uniform(kb, (1, fan_out), dtype, -bound, bound)
        return w, b

    w1, b1 = linear(keys[0], keys[1], input_shape, hidden_dim)
    w2, b2 = linear(keys[2], keys[3], hidden_dim, hidden_dim)
    w3, b3 = linear(keys[4], keys[5], hidden_dim, n_actions)
    return (w1, b1, w2, b2, w3, b3)


if __name__ == "__main__":
    # Small logical sizes consistent with the module (agents/timesteps flattened into B).
    batch = 70            # deliberately not a tile multiple (exercises batch padding)
    input_shape = 16      # observation feature size
    hidden_dim = 32       # args.hidden_dim
    n_actions = 8         # args.n_actions

    key = jax.random.PRNGKey(0)
    k_in, k_params = jax.random.split(key)
    inputs = jax.random.normal(k_in, (batch, input_shape), dtype=jnp.float32)
    params = init_params(k_params, input_shape, hidden_dim, n_actions)

    w1, b1, w2, b2, w3, b3 = params
    ref = jnp.maximum(inputs @ w1 + b1, 0.0)
    ref = jnp.maximum(ref @ w2 + b2, 0.0)
    ref = ref @ w3 + b3

    # f32 path: pad/cast the params once, then reuse across forward calls.
    prepared = prepare_params(params)
    q, h = mlp_agent_forward(inputs, prepared)                    # grid=(1,)
    q = jax.block_until_ready(q)
    assert q.shape == (batch, n_actions)
    assert h is None
    assert jnp.allclose(q, ref, atol=1e-5, rtol=1e-5)

    # Multi-tile grid (what you'd use on v7x: >= 2 'parallel' batch tiles).
    q_mt, _ = mlp_agent_forward(inputs, prepared, tile_m=32, min_tiles=2)
    q_mt = jax.block_until_ready(q_mt)
    assert jnp.allclose(q_mt, ref, atol=1e-5, rtol=1e-5)

    # bf16 matmul-input path (halves DMA bytes on v5e/v6e/v7x; f32 accumulation).
    prepared_bf16 = prepare_params(params, compute_dtype=jnp.bfloat16)
    q_bf16, _ = mlp_agent_forward(inputs, prepared_bf16)
    q_bf16 = jax.block_until_ready(q_bf16)
    assert q_bf16.shape == (batch, n_actions)
    assert jnp.allclose(q_bf16, ref, atol=2e-1, rtol=5e-2)

    print("KERNEL_OK")
</pallas_src>

<mosaic_0001>
module attributes {stable_mosaic.version = 11 : i64} {
  func.func @_mlp_kernel(%arg0: i32, %arg1: memref<72x16xf32, #tpu.memory_space<vmem>>, %arg2: memref<16x128xf32, #tpu.memory_space<vmem>>, %arg3: memref<1x128xf32, #tpu.memory_space<vmem>>, %arg4: memref<128x128xf32, #tpu.memory_space<vmem>>, %arg5: memref<1x128xf32, #tpu.memory_space<vmem>>, %arg6: memref<128x8xf32, #tpu.memory_space<vmem>>, %arg7: memref<1x8xf32, #tpu.memory_space<vmem>>, %arg8: memref<72x8xf32, #tpu.memory_space<vmem>>) attributes {dimension_semantics = [#tpu.dimension_semantics<parallel>], iteration_bounds = array<i64: 1>, scalar_prefetch = 0 : i64, scratch_operands = 0 : i64, tpu.core_type = #tpu.core_type<tc>, window_params = [{transform_indices = @transform_0, window_bounds = array<i64: 72, 16>}, {pipeline_mode = #tpu.pipeline_mode<synchronous>, transform_indices = @transform_1, window_bounds = array<i64: 16, 128>}, {pipeline_mode = #tpu.pipeline_mode<synchronous>, transform_indices = @transform_2, window_bounds = array<i64: 1, 128>}, {pipeline_mode = #tpu.pipeline_mode<synchronous>, transform_indices = @transform_3, window_bounds = array<i64: 128, 128>}, {pipeline_mode = #tpu.pipeline_mode<synchronous>, transform_indices = @transform_4, window_bounds = array<i64: 1, 128>}, {pipeline_mode = #tpu.pipeline_mode<synchronous>, transform_indices = @transform_5, window_bounds = array<i64: 128, 8>}, {pipeline_mode = #tpu.pipeline_mode<synchronous>, transform_indices = @transform_6, window_bounds = array<i64: 1, 8>}, {transform_indices = @transform_7, window_bounds = array<i64: 72, 8>}]} {
    %c0 = arith.constant 0 : index
    %c0_0 = arith.constant 0 : index
    %0 = vector.load %arg1[%c0, %c0_0] : memref<72x16xf32, #tpu.memory_space<vmem>>, vector<72x16xf32>
    %c0_1 = arith.constant 0 : index
    %c0_2 = arith.constant 0 : index
    %1 = vector.load %arg2[%c0_1, %c0_2] : memref<16x128xf32, #tpu.memory_space<vmem>>, vector<16x128xf32>
    %cst = arith.constant dense<0.000000e+00> : vector<72x128xf32>
    %2 = tpu.matmul %0, %1, %cst {dimension_numbers = #tpu.dot_dimension_numbers<[1], [0], [0], [1], [0, 0, 1, 1], [], []>} : vector<72x16xf32>, vector<16x128xf32>, vector<72x128xf32> -> vector<72x128xf32>
    %c0_3 = arith.constant 0 : index
    %c0_4 = arith.constant 0 : index
    %3 = vector.load %arg3[%c0_3, %c0_4] : memref<1x128xf32, #tpu.memory_space<vmem>>, vector<1x128xf32>
    %4 = vector.broadcast %3 : vector<1x128xf32> to vector<72x128xf32>
    %5 = arith.addf %2, %4 : vector<72x128xf32>
    %cst_5 = arith.constant 0.000000e+00 : f32
    %6 = vector.broadcast %cst_5 : f32 to vector<72x128xf32>
    %7 = arith.maximumf %5, %6 : vector<72x128xf32>
    %c0_6 = arith.constant 0 : index
    %c0_7 = arith.constant 0 : index
    %8 = vector.load %arg4[%c0_6, %c0_7] : memref<128x128xf32, #tpu.memory_space<vmem>>, vector<128x128xf32>
    %cst_8 = arith.constant dense<0.000000e+00> : vector<72x128xf32>
    %9 = tpu.matmul %7, %8, %cst_8 {dimension_numbers = #tpu.dot_dimension_numbers<[1], [0], [0], [1], [0, 0, 1, 1], [], []>} : vector<72x128xf32>, vector<128x128xf32>, vector<72x128xf32> -> vector<72x128xf32>
    %c0_9 = arith.constant 0 : index
    %c0_10 = arith.constant 0 : index
    %10 = vector.load %arg5[%c0_9, %c0_10] : memref<1x128xf32, #tpu.memory_space<vmem>>, vector<1x128xf32>
    %11 = vector.broadcast %10 : vector<1x128xf32> to vector<72x128xf32>
    %12 = arith.addf %9, %11 : vector<72x128xf32>
    %cst_11 = arith.constant 0.000000e+00 : f32
    %13 = vector.broadcast %cst_11 : f32 to vector<72x128xf32>
    %14 = arith.maximumf %12, %13 : vector<72x128xf32>
    %c0_12 = arith.constant 0 : index
    %c0_13 = arith.constant 0 : index
    %15 = vector.load %arg6[%c0_12, %c0_13] : memref<128x8xf32, #tpu.memory_space<vmem>>, vector<128x8xf32>
    %cst_14 = arith.constant dense<0.000000e+00> : vector<72x8xf32>
    %16 = tpu.matmul %14, %15, %cst_14 {dimension_numbers = #tpu.dot_dimension_numbers<[1], [0], [0], [1], [0, 0, 1, 1], [], []>} : vector<72x128xf32>, vector<128x8xf32>, vector<72x8xf32> -> vector<72x8xf32>
    %c0_15 = arith.constant 0 : index
    %c0_16 = arith.constant 0 : index
    %17 = vector.load %arg7[%c0_15, %c0_16] : memref<1x8xf32, #tpu.memory_space<vmem>>, vector<1x8xf32>
    %18 = vector.broadcast %17 : vector<1x8xf32> to vector<72x8xf32>
    %19 = arith.addf %16, %18 : vector<72x8xf32>
    %c0_17 = arith.constant 0 : index
    %c0_18 = arith.constant 0 : index
    %20 = vector.load %arg8[%c0_17, %c0_18] : memref<72x8xf32, #tpu.memory_space<vmem>>, vector<72x8xf32>
    tpu.vector_store %arg8[%c0_17, %c0_18], %19 {strides = array<i32>} : memref<72x8xf32, #tpu.memory_space<vmem>>, vector<72x8xf32>,
    return
  }
  func.func @transform_0(%arg0: i32) -> (i32, i32) {
    %c0_i32 = arith.constant 0 : i32
    %c0_i32_0 = arith.constant 0 : i32
    return %arg0, %c0_i32 : i32, i32
  }
  func.func @transform_1(%arg0: i32) -> (i32, i32) {
    %c0_i32 = arith.constant 0 : i32
    %c0_i32_0 = arith.constant 0 : i32
    %c0_i32_1 = arith.constant 0 : i32
    return %c0_i32, %c0_i32_0 : i32, i32
  }
  func.func @transform_2(%arg0: i32) -> (i32, i32) {
    %c0_i32 = arith.constant 0 : i32
    %c0_i32_0 = arith.constant 0 : i32
    %c0_i32_1 = arith.constant 0 : i32
    return %c0_i32, %c0_i32_0 : i32, i32
  }
  func.func @transform_3(%arg0: i32) -> (i32, i32) {
    %c0_i32 = arith.constant 0 : i32
    %c0_i32_0 = arith.constant 0 : i32
    %c0_i32_1 = arith.constant 0 : i32
    return %c0_i32, %c0_i32_0 : i32, i32
  }
  func.func @transform_4(%arg0: i32) -> (i32, i32) {
    %c0_i32 = arith.constant 0 : i32
    %c0_i32_0 = arith.constant 0 : i32
    %c0_i32_1 = arith.constant 0 : i32
    return %c0_i32, %c0_i32_0 : i32, i32
  }
  func.func @transform_5(%arg0: i32) -> (i32, i32) {
    %c0_i32 = arith.constant 0 : i32
    %c0_i32_0 = arith.constant 0 : i32
    %c0_i32_1 = arith.constant 0 : i32
    return %c0_i32, %c0_i32_0 : i32, i32
  }
  func.func @transform_6(%arg0: i32) -> (i32, i32) {
    %c0_i32 = arith.constant 0 : i32
    %c0_i32_0 = arith.constant 0 : i32
    %c0_i32_1 = arith.constant 0 : i32
    return %c0_i32, %c0_i32_0 : i32, i32
  }
  func.func @transform_7(%arg0: i32) -> (i32, i32) {
    %c0_i32 = arith.constant 0 : i32
    %c0_i32_0 = arith.constant 0 : i32
    return %arg0, %c0_i32 : i32, i32
  }
}

</mosaic_0001>

<bundles_post_ra>
// kernel: tpu_custom_call.1
= control target key start
LH: loop header
LB: loop body
LE: loop exit
PB: predicated region body
PF: predicated region fallthrough
CT: control target
= control target key end

     0   :  { %vm41_vm0 = vcmask 130048   ;;  %vm259_vm1 = vcmask 64512   ;;  %s551_s1 = inlined_call_operand.vmem [shape: f32[16,128], index: 1, kind: input, shape index: {}]   ;;  %s552_s0 = inlined_call_operand.vmem [shape: f32[72,16], index: 0, kind: input, shape index: {}]   ;;  %s553_s2 = inlined_call_operand.vmem [shape: f32[1,128], index: 2, kind: input, shape index: {}]   ;;  %s554_s3 = inlined_call_operand.vmem [shape: f32[128,128], index: 3, kind: input, shape index: {}]   ;;  %s555_s4 = inlined_call_operand.vmem [shape: f32[1,128], index: 4, kind: input, shape index: {}]   ;;  %s556_s5 = inlined_call_operand.vmem [shape: f32[128,8], index: 5, kind: input, shape index: {}]   ;;  %s557_s6 = inlined_call_operand.vmem [shape: f32[1,8], index: 6, kind: input, shape index: {}]   ;;  %s558_s7 = inlined_call_operand.vmem [shape: f32[72,8], index: 7, kind: output, shape index: {}]  }
   0x1   :  { %v36_v0 = vld [vmem:[%s551_s1 + $0x8] sm:$0xff]  ;;  %v35_v1 = vld [vmem:[%s551_s1] sm:$0xff]  ;;  %v28_v4 = vld [vmem:[%s552_s0 + $0x10] sm:$0xff] }
   0x2   :  { %83 = vmatpush.msra.mxu0 %v36_v0  ;;  %v26_v2 = vld [vmem:[%s552_s0] sm:$0xff]  ;;  %v27_v3 = vld [vmem:[%s552_s0 + $0x8] sm:$0xff]  ;;  %v29_v5 = vld [vmem:[%s552_s0 + $0x18] sm:$0xff] }
   0x3   :  { %v30_v6 = vld [vmem:[%s552_s0 + $0x20] sm:$0xff]  ;;  %v137_v7 = vld [vmem:[%s554_s3 + $0x78] sm:$0xff]  ;;  %v136_v8 = vld [vmem:[%s554_s3 + $0x70] sm:$0xff] }
   0x4   :  { %84 = vmatpush.msra.mxu0 %v35_v1  ;;  %142 = vmatpush.msra.mxu1 %v137_v7  ;;  %v135_v9 = vld [vmem:[%s554_s3 + $0x68] sm:$0xff]  ;;  %v134_v10 = vld [vmem:[%s554_s3 + $0x60] sm:$0xff]  ;;  %v133_v12 = vld [vmem:[%s554_s3 + $0x58] sm:$0xff] }
   0x5   :  { %273 = vmatmul.msk.f32.vlgmr.msra.gmra.mxu0 %vm41_vm0, %v26_v2  ;;  %282 = vmatpush.msra.mxu3 %v137_v7  ;;  %v31_v11 = vld [vmem:[%s552_s0 + $0x28] sm:$0xff]  ;;  %v132_v13 = vld [vmem:[%s554_s3 + $0x50] sm:$0xff]  ;;  %v130_v15 = vld [vmem:[%s554_s3 + $0x40] sm:$0xff] }
   0x6   :  { %143 = vmatpush.msra.mxu1 %v136_v8  ;;  %v131_v14 = vld [vmem:[%s554_s3 + $0x48] sm:$0xff]  ;;  %v32_v16 = vld [vmem:[%s552_s0 + $0x30] sm:$0xff]  ;;  %v129_v17 = vld [vmem:[%s554_s3 + $0x38] sm:$0xff] }
   0x7   :  { %283 = vmatpush.msra.mxu3 %v136_v8  ;;  %v128_v18 = vld [vmem:[%s554_s3 + $0x30] sm:$0xff]  ;;  %v127_v19 = vld [vmem:[%s554_s3 + $0x28] sm:$0xff]  ;;  %v126_v20 = vld [vmem:[%s554_s3 + $0x20] sm:$0xff] }
   0x8   :  { %144 = vmatpush.msra.mxu1 %v135_v9  ;;  %v33_v21 = vld [vmem:[%s552_s0 + $0x38] sm:$0xff]  ;;  %v34_v23 = vld [vmem:[%s552_s0 + $0x40] sm:$0xff]  ;;  %v124_v24 = vld [vmem:[%s554_s3 + $0x10] sm:$0xff] }
   0x9   :  { %284 = vmatpush.msra.mxu3 %v135_v9  ;;  %v125_v22 = vld [vmem:[%s554_s3 + $0x18] sm:$0xff]  ;;  %v123_v25 = vld [vmem:[%s554_s3 + $0x8] sm:$0xff]  ;;  %v122_v26 = vld [vmem:[%s554_s3] sm:$0xff] }
   0xa   :  { %145 = vmatpush.msra.mxu1 %v134_v10  ;;  %v450_v27 = vld [vmem:[%s553_s2] ss:$0 sm:$0xff]  ;;  %v210_v43 = vld [vmem:[%s556_s5 + $0x78] sm:$0xff]  ;;  %v209_v44 = vld [vmem:[%s556_s5 + $0x70] sm:$0xff] }
   0xb   :  { %285 = vmatpush.msra.mxu3 %v134_v10  ;;  %215 = vmatpush.msra.mxu2 %v210_v43  ;;  %v208_v45 = vld [vmem:[%s556_s5 + $0x68] sm:$0xff]  ;;  %v207_v48 = vld [vmem:[%s556_s5 + $0x60] sm:$0xff]  ;;  %v206_v50 = vld [vmem:[%s556_s5 + $0x58] sm:$0xff] }
   0xc   :  { %146 = vmatpush.msra.mxu1 %v133_v12  ;;  %v205_v51 = vld [vmem:[%s556_s5 + $0x50] sm:$0xff]  ;;  %v204_v52 = vld [vmem:[%s556_s5 + $0x48] sm:$0xff]  ;;  %v203_v55 = vld [vmem:[%s556_s5 + $0x40] sm:$0xff] }
   0xd   :  { %274 = vmatmul.msk.f32.gmra.mxu0 %vm41_vm0, %v27_v3  ;;  %286 = vmatpush.msra.mxu3 %v133_v12  ;;  %v202_v57 = vld [vmem:[%s556_s5 + $0x38] sm:$0xff]  ;;  %v201_v58 = vld [vmem:[%s556_s5 + $0x30] sm:$0xff]  ;;  %v200_v59 = vld [vmem:[%s556_s5 + $0x28] sm:$0xff] }
   0xe   :  { %147 = vmatpush.msra.mxu1 %v132_v13  ;;  %216 = vmatpush.msra.mxu2 %v209_v44  ;;  %v199_v62 = vld [vmem:[%s556_s5 + $0x20] sm:$0xff]  ;;  %v198_v0 = vld [vmem:[%s556_s5 + $0x18] sm:$0xff] }
   0xf   :  { %287 = vmatpush.msra.mxu3 %v132_v13  ;;  %v315_v7 = vld [vmem:[%s555_s4] ss:$0 sm:$0xff] }
  0x10   :  { %148 = vmatpush.msra.mxu1 %v131_v14  ;;  %217 = vmatpush.msra.mxu2 %v208_v45 }
  0x11   :  { %288 = vmatpush.msra.mxu3 %v131_v14 }
  0x12   :  { %149 = vmatpush.msra.mxu1 %v130_v15  ;;  %218 = vmatpush.msra.mxu2 %v207_v48 }
  0x13   :  { %289 = vmatpush.msra.mxu3 %v130_v15 }
  0x14   :  { %150 = vmatpush.msra.mxu1 %v129_v17  ;;  %219 = vmatpush.msra.mxu2 %v206_v50 }
  0x15   :  { %275 = vmatmul.msk.f32.gmra.mxu0 %vm41_vm0, %v28_v4  ;;  %290 = vmatpush.msra.mxu3 %v129_v17  ;;  %v197_v4 = vld [vmem:[%s556_s5 + $0x10] sm:$0xff] }
  0x16   :  { %151 = vmatpush.msra.mxu1 %v128_v18  ;;  %220 = vmatpush.msra.mxu2 %v205_v51 }
  0x17   :  { %291 = vmatpush.msra.mxu3 %v128_v18 }
  0x18   :  { %152 = vmatpush.msra.mxu1 %v127_v19  ;;  %221 = vmatpush.msra.mxu2 %v204_v52 }
  0x19   :  { %292 = vmatpush.msra.mxu3 %v127_v19 }
  0x1a   :  { %153 = vmatpush.msra.mxu1 %v126_v20  ;;  %222 = vmatpush.msra.mxu2 %v203_v55 }
  0x1b   :  { %293 = vmatpush.msra.mxu3 %v126_v20 }
  0x1c   :  { %154 = vmatpush.msra.mxu1 %v125_v22  ;;  %223 = vmatpush.msra.mxu2 %v202_v57 }
  0x1d   :  { %276 = vmatmul.msk.f32.gmra.mxu0 %vm41_vm0, %v29_v5  ;;  %294 = vmatpush.msra.mxu3 %v125_v22  ;;  %v196_v5 = vld [vmem:[%s556_s5 + $0x8] sm:$0xff] }
  0x1e   :  { %155 = vmatpush.msra.mxu1 %v124_v24  ;;  %224 = vmatpush.msra.mxu2 %v201_v58 }
  0x1f   :  { %295 = vmatpush.msra.mxu3 %v124_v24 }
  0x20   :  { %156 = vmatpush.msra.mxu1 %v123_v25  ;;  %225 = vmatpush.msra.mxu2 %v200_v59 }
  0x21   :  { %296 = vmatpush.msra.mxu3 %v123_v25 }
  0x22   :  { %157 = vmatpush.msra.mxu1 %v122_v26  ;;  %226 = vmatpush.msra.mxu2 %v199_v62 }
  0x23   :  { %297 = vmatpush.msra.mxu3 %v122_v26 }
  0x24   :  { %227 = vmatpush.msra.mxu2 %v198_v0 }
  0x25   :  { %277 = vmatmul.msk.f32.gmra.mxu0 %vm41_vm0, %v30_v6  ;;  %298 = vmatpush.msrb.mxu3 %v210_v43  ;;  %v195_v6 = vld [vmem:[%s556_s5] sm:$0xff] }
  0x26   :  { %228 = vmatpush.msra.mxu2 %v197_v4 }
  0x27   :  { %299 = vmatpush.msrb.mxu3 %v209_v44 }
  0x28   :  { %229 = vmatpush.msra.mxu2 %v196_v5 }
  0x29   :  { %300 = vmatpush.msrb.mxu3 %v208_v45 }
  0x2a   :  { %230 = vmatpush.msra.mxu2 %v195_v6 }
  0x2b   :  { %301 = vmatpush.msrb.mxu3 %v207_v48 }
  0x2d   :  { %278 = vmatmul.msk.f32.gmra.mxu0 %vm41_vm0, %v31_v11  ;;  %302 = vmatpush.msrb.mxu3 %v206_v50 }
  0x2f   :  { %303 = vmatpush.msrb.mxu3 %v205_v51 }
  0x31   :  { %304 = vmatpush.msrb.mxu3 %v204_v52 }
  0x33   :  { %305 = vmatpush.msrb.mxu3 %v203_v55 }
  0x35   :  { %279 = vmatmul.msk.f32.gmra.mxu0 %vm41_vm0, %v32_v16  ;;  %306 = vmatpush.msrb.mxu3 %v202_v57 }
  0x37   :  { %307 = vmatpush.msrb.mxu3 %v201_v58 }
  0x39   :  { %308 = vmatpush.msrb.mxu3 %v200_v59 }
  0x3b   :  { %309 = vmatpush.msrb.mxu3 %v199_v62 }
  0x3d   :  { %280 = vmatmul.msk.f32.gmra.mxu0 %vm41_vm0, %v33_v21  ;;  %310 = vmatpush.msrb.mxu3 %v198_v0 }
  0x3f   :  { %311 = vmatpush.msrb.mxu3 %v197_v4 }
  0x41   :  { %312 = vmatpush.msrb.mxu3 %v196_v5 }
  0x43   :  { %313 = vmatpush.msrb.mxu3 %v195_v6 }
  0x45   :  { %281 = vmatmul.msk.f32.gmra.mxu0 %vm41_vm0, %v34_v23 }
  0x82   :  { %v86_v28 = vpop.f32.mrf.mxu0 }
  0x83   :  { %v87_v29 = vadd.f32 %v450_v27, %v86_v28 }
  0x85   :  { %v113_v30 = vmax.f32 %v87_v29, 0.0 }
  0x87   :  { %158 = vmatmul.f32.vlgmr.msra.gmra.mxu1 %v113_v30 }
  0x8a   :  { %v89_v31 = vpop.f32.mrf.mxu0 }
  0x8b   :  { %v90_v32 = vadd.f32 %v450_v27, %v89_v31 }
  0x8d   :  { %v114_v33 = vmax.f32 %v90_v32, 0.0 }
  0x8f   :  { %161 = vmatmul.f32.gmra.mxu1 %v114_v33 }
  0x92   :  { %v92_v34 = vpop.f32.mrf.mxu0 }
  0x93   :  { %v93_v35 = vadd.f32 %v450_v27, %v92_v34 }
  0x95   :  { %v115_v36 = vmax.f32 %v93_v35, 0.0  ;;  %v316_v35 = vld [vmem:[%s557_s6] ss:$0 sm:$0xff] }
  0x97   :  { %164 = vmatmul.f32.gmra.mxu1 %v115_v36 }
  0x9a   :  { %v95_v37 = vpop.f32.mrf.mxu0 }
  0x9b   :  { %v96_v38 = vadd.f32 %v450_v27, %v95_v37 }
  0x9d   :  { %v116_v39 = vmax.f32 %v96_v38, 0.0 }
  0x9f   :  { %167 = vmatmul.f32.gmra.mxu1 %v116_v39 }
  0xa2   :  { %v98_v40 = vpop.f32.mrf.mxu0 }
  0xa3   :  { %v99_v41 = vadd.f32 %v450_v27, %v98_v40 }
  0xa5   :  { %v117_v42 = vmax.f32 %v99_v41, 0.0 }
  0xa7   :  { %170 = vmatmul.f32.gmra.mxu1 %v117_v42 }
  0xaa   :  { %v101_v46 = vpop.f32.mrf.mxu0 }
  0xab   :  { %v102_v47 = vadd.f32 %v450_v27, %v101_v46 }
  0xad   :  { %v118_v49 = vmax.f32 %v102_v47, 0.0 }
  0xaf   :  { %173 = vmatmul.f32.gmra.mxu1 %v118_v49 }
  0xb2   :  { %v104_v53 = vpop.f32.mrf.mxu0 }
  0xb3   :  { %v105_v54 = vadd.f32 %v450_v27, %v104_v53 }
  0xb5   :  { %v119_v56 = vmax.f32 %v105_v54, 0.0 }
  0xb7   :  { %176 = vmatmul.f32.vlgmr.msra.gmra.mxu3 %v119_v56 }
  0xba   :  { %v107_v60 = vpop.f32.mrf.mxu0 }
  0xbb   :  { %v108_v61 = vadd.f32 %v450_v27, %v107_v60 }
  0xbd   :  { %v120_v63 = vmax.f32 %v108_v61, 0.0 }
  0xbf   :  { %179 = vmatmul.f32.gmra.mxu3 %v120_v63 }
  0xc2   :  { %v110_v1 = vpop.f32.mrf.mxu0 }
  0xc3   :  { %v111_v2 = vadd.f32 %v450_v27, %v110_v1 }
  0xc5   :  { %v121_v3 = vmax.f32 %v111_v2, 0.0 }
  0xc7   :  { %182 = vmatmul.f32.gmra.mxu3 %v121_v3 }
 0x104   :  { %v159_v8 = vpop.f32.mrf.mxu1 }
 0x105   :  { %v160_v9 = vadd.f32 %v315_v7, %v159_v8 }
 0x107   :  { %v186_v10 = vmax.f32 %v160_v9, 0.0 }
 0x109   :  { %231 = vmatmul.f32.vlgmr.msra.gmra.mxu2 %v186_v10 }
 0x10c   :  { %v162_v11 = vpop.f32.mrf.mxu1 }
 0x10d   :  { %v163_v12 = vadd.f32 %v315_v7, %v162_v11 }
 0x10f   :  { %v187_v13 = vmax.f32 %v163_v12, 0.0 }
 0x111   :  { %234 = vmatmul.f32.gmra.mxu2 %v187_v13 }
 0x114   :  { %v165_v14 = vpop.f32.mrf.mxu1 }
 0x115   :  { %v166_v15 = vadd.f32 %v315_v7, %v165_v14 }
 0x117   :  { %v188_v16 = vmax.f32 %v166_v15, 0.0 }
 0x119   :  { %237 = vmatmul.f32.gmra.mxu2 %v188_v16 }
 0x11c   :  { %v168_v17 = vpop.f32.mrf.mxu1 }
 0x11d   :  { %v169_v18 = vadd.f32 %v315_v7, %v168_v17 }
 0x11f   :  { %v189_v19 = vmax.f32 %v169_v18, 0.0 }
 0x121   :  { %240 = vmatmul.f32.gmra.mxu2 %v189_v19 }
 0x124   :  { %v171_v20 = vpop.f32.mrf.mxu1 }
 0x125   :  { %v172_v21 = vadd.f32 %v315_v7, %v171_v20 }
 0x127   :  { %v190_v22 = vmax.f32 %v172_v21, 0.0 }
 0x129   :  { %243 = vmatmul.f32.gmra.mxu2 %v190_v22 }
 0x12c   :  { %v174_v23 = vpop.f32.mrf.mxu1 }
 0x12d   :  { %v175_v24 = vadd.f32 %v315_v7, %v174_v23 }
 0x12f   :  { %v191_v25 = vmax.f32 %v175_v24, 0.0 }
 0x131   :  { %246 = vmatmul.f32.gmra.mxu2 %v191_v25 }
 0x13a   :  { %v177_v26 = vpop.f32.mrf.mxu3 }
 0x13b   :  { %v178_v27 = vadd.f32 %v315_v7, %v177_v26 }
 0x13d   :  { %v192_v28 = vmax.f32 %v178_v27, 0.0 }
 0x13f   :  { %249 = vmatmul.f32.gmra.mxu2 %v192_v28 }
 0x142   :  { %v180_v29 = vpop.f32.mrf.mxu3 }
 0x143   :  { %v181_v30 = vadd.f32 %v315_v7, %v180_v29 }
 0x145   :  { %v193_v31 = vmax.f32 %v181_v30, 0.0 }
 0x147   :  { %252 = vmatmul.f32.vlgmr.msrb.gmra.mxu3 %v193_v31 }
 0x14a   :  { %v183_v32 = vpop.f32.mrf.mxu3 }
 0x14b   :  { %v184_v33 = vadd.f32 %v315_v7, %v183_v32 }
 0x14d   :  { %v194_v34 = vmax.f32 %v184_v33, 0.0 }
 0x14f   :  { %255 = vmatmul.f32.gmra.mxu3 %v194_v34 }
 0x18c   :  { %v232_v36 = vpop.f32.mrf.mxu2 }
 0x18d   :  { %v233_v37 = vadd.f32 %v316_v35, %v232_v36 }
 0x18f   :  { %260 = vst.msk [vmem:[%s558_s7] sm:$0xff] %vm259_vm1, %v233_v37 }
 0x194   :  { %v235_v38 = vpop.f32.mrf.mxu2 }
 0x195   :  { %v236_v39 = vadd.f32 %v316_v35, %v235_v38 }
 0x197   :  { %261 = vst.msk [vmem:[%s558_s7 + $0x8] sm:$0xff] %vm259_vm1, %v236_v39 }
 0x19c   :  { %v238_v40 = vpop.f32.mrf.mxu2 }
 0x19d   :  { %v239_v41 = vadd.f32 %v316_v35, %v238_v40 }
 0x19f   :  { %262 = vst.msk [vmem:[%s558_s7 + $0x10] sm:$0xff] %vm259_vm1, %v239_v41 }
 0x1a4   :  { %v241_v42 = vpop.f32.mrf.mxu2 }
 0x1a5   :  { %v242_v43 = vadd.f32 %v316_v35, %v241_v42 }
 0x1a7   :  { %263 = vst.msk [vmem:[%s558_s7 + $0x18] sm:$0xff] %vm259_vm1, %v242_v43 }
 0x1ac   :  { %v244_v44 = vpop.f32.mrf.mxu2 }
 0x1ad   :  { %v245_v45 = vadd.f32 %v316_v35, %v244_v44 }
 0x1af   :  { %264 = vst.msk [vmem:[%s558_s7 + $0x20] sm:$0xff] %vm259_vm1, %v245_v45 }
 0x1b4   :  { %v247_v46 = vpop.f32.mrf.mxu2 }
 0x1b5   :  { %v248_v47 = vadd.f32 %v316_v35, %v247_v46 }
 0x1b7   :  { %265 = vst.msk [vmem:[%s558_s7 + $0x28] sm:$0xff] %vm259_vm1, %v248_v47 }
 0x1c2   :  { %v250_v48 = vpop.f32.mrf.mxu2 }
 0x1c3   :  { %v251_v49 = vadd.f32 %v316_v35, %v250_v48 }
 0x1c5   :  { %266 = vst.msk [vmem:[%s558_s7 + $0x30] sm:$0xff] %vm259_vm1, %v251_v49 }
 0x1ca   :  { %v253_v50 = vpop.f32.mrf.mxu3 }
 0x1cb   :  { %v254_v51 = vadd.f32 %v316_v35, %v253_v50 }
 0x1cd   :  { %267 = vst.msk [vmem:[%s558_s7 + $0x38] sm:$0xff] %vm259_vm1, %v254_v51 }
 0x1d2   :  { %v256_v52 = vpop.f32.mrf.mxu3 }
 0x1d3   :  { %v257_v53 = vadd.f32 %v316_v35, %v256_v52 }
 0x1d5   :  { %268 = vst.msk [vmem:[%s558_s7 + $0x40] sm:$0xff] %vm259_vm1, %v257_v53 }

</bundles_post_ra>
